<compile_context>
chip_gen: v7x
topology: tpu7x:2x2x1
jax: 0.10.0
libtpu: 0.0.40
codegen_flags: <defaults>
</compile_context>

<pallas_src>
import numpy as np
import jax
import jax.numpy as jnp
from jax.experimental import pallas as pl
from jax.experimental.pallas import tpu as pltpu

_SUBLANE = 8
_MIN_LANE = 128
# Per-block byte cap: 2 arrays x 2 double-buffers x 2 MiB = 8 MiB, comfortably
# under the 16 MiB scoped-VMEM default on v5e (and far under v6e/v7x limits).
_BLOCK_BYTES_CAP = 2 * 1024 * 1024


def _copy_kernel(x_ref, o_ref):
    # Pure pass-through of the current VMEM tile: zero VALU work, so the
    # kernel is bound only by the load/store slots + HBM DMA, which is the
    # floor for an identity op.
    o_ref[...] = x_ref[...]


@jax.jit
def pallas_identity(x):
    """Copy `x` through a tiled Pallas kernel using large lane-dense blocks."""
    orig_shape = x.shape
    flat = x.reshape(-1)
    n = flat.shape[0]

    # Minimal padding so the slab satisfies the (8, 128) tiling constraint.
    # (For most shapes — including the test input — pad == 0 and this is a
    # free metadata-only reshape under jit.)
    tile_elems = _SUBLANE * _MIN_LANE
    pad = (-n) % tile_elems
    if pad:
        flat = jnp.pad(flat, (0, pad))
    n_padded = flat.shape[0]

    # Pick the widest lane dimension (multiple of 128) that divides the data:
    # wide, unmasked full-width vector stores are the biggest measured lever
    # for a store/load-bound copy kernel.
    width = _MIN_LANE
    for cand in (2048, 1024, 512, 256, 128):
        if n_padded % (_SUBLANE * cand) == 0:
            width = cand
            break
    rows = n_padded // width           # multiple of 8 by construction
    slab = flat.reshape(rows, width)

    # Large blocks amortize the ~600-cycle per-grid-step overhead; cap block
    # bytes so double-buffered in+out tiles fit every generation's scoped VMEM
    # (v7x has only 64 MiB physical VMEM — stay conservative).
    itemsize = jnp.dtype(slab.dtype).itemsize
    max_rows = max(
        _SUBLANE,
        (_BLOCK_BYTES_CAP // (width * itemsize)) // _SUBLANE * _SUBLANE,
    )
    block_rows = min(rows, max_rows)
    grid = (pl.cdiv(rows, block_rows),)

    out = pl.pallas_call(
        _copy_kernel,
        out_shape=jax.ShapeDtypeStruct((rows, width), slab.dtype),
        grid=grid,
        in_specs=[pl.BlockSpec((block_rows, width), lambda i: (i, 0))],
        out_specs=pl.BlockSpec((block_rows, width), lambda i: (i, 0)),
        # Alias input -> output: no separate output HBM allocation / extra
        # writeback traffic for the identity op.
        input_output_aliases={0: 0},
        compiler_params=pltpu.CompilerParams(
            # "parallel" lets the two TensorCores of a v7x chip split the grid;
            # it is a no-op on single-TC v5e/v6e.
            dimension_semantics=("parallel",),
        ),
    )(slab)

    out_flat = out.reshape(-1)
    if pad:
        out_flat = out_flat[:n]
    return out_flat.reshape(orig_shape)


class DNN:
    """JAX/Pallas mirror of the (empty) PyTorch DNN module."""

    def __init__(self):
        # Reference __init__ defines no parameters.
        pass

    def forward(self, sample):
        # TODO(synk): the reference forward() has an empty body and returns
        # None; there is no computation to lower, so the optimal "kernel" is
        # no kernel at all (zero HBM traffic, zero dispatch).
        return None

    __call__ = forward


if __name__ == "__main__":
    key = jax.random.PRNGKey(0)
    x = jax.random.normal(key, (2, 4, 16, 16), dtype=jnp.float32)
    expected = np.asarray(jax.device_get(x))  # host copy (kernel aliases buffers)

    # Module forward matches the reference exactly: no compute, returns None.
    model = DNN()
    assert model(x) is None

    # Exercise the optimized Pallas copy kernel once and verify it bit-exactly.
    y = pallas_identity(x)
    jax.block_until_ready(y)
    np.testing.assert_array_equal(np.asarray(jax.device_get(y)), expected)

    print("KERNEL_OK")
</pallas_src>

<mosaic_0001>
module attributes {stable_mosaic.version = 11 : i64} {
  func.func @_copy_kernel(%arg0: i32, %arg1: memref<8x256xf32, #tpu.memory_space<vmem>>, %arg2: memref<8x256xf32, #tpu.memory_space<vmem>>) attributes {dimension_semantics = [#tpu.dimension_semantics<parallel>], iteration_bounds = array<i64: 1>, scalar_prefetch = 0 : i64, scratch_operands = 0 : i64, tpu.core_type = #tpu.core_type<tc>, window_params = [{transform_indices = @transform_0, window_bounds = array<i64: 8, 256>}, {transform_indices = @transform_1, window_bounds = array<i64: 8, 256>}]} {
    %c0 = arith.constant 0 : index
    %c0_0 = arith.constant 0 : index
    %0 = vector.load %arg1[%c0, %c0_0] : memref<8x256xf32, #tpu.memory_space<vmem>>, vector<8x256xf32>
    %c0_1 = arith.constant 0 : index
    %c0_2 = arith.constant 0 : index
    %1 = vector.load %arg2[%c0_1, %c0_2] : memref<8x256xf32, #tpu.memory_space<vmem>>, vector<8x256xf32>
    tpu.vector_store %arg2[%c0_1, %c0_2], %0 {strides = array<i32>} : memref<8x256xf32, #tpu.memory_space<vmem>>, vector<8x256xf32>,
    return
  }
  func.func @transform_0(%arg0: i32) -> (i32, i32) {
    %c0_i32 = arith.constant 0 : i32
    %c0_i32_0 = arith.constant 0 : i32
    return %arg0, %c0_i32 : i32, i32
  }
  func.func @transform_1(%arg0: i32) -> (i32, i32) {
    %c0_i32 = arith.constant 0 : i32
    %c0_i32_0 = arith.constant 0 : i32
    return %arg0, %c0_i32 : i32, i32
  }
}

</mosaic_0001>

<bundles_post_ra>
// kernel: pallas_identity.1
= control target key start
LH: loop header
LB: loop body
LE: loop exit
PB: predicated region body
PF: predicated region fallthrough
CT: control target
= control target key end

     0   :  { %s38_s0 = inlined_call_operand.vmem [shape: f32[8,256], index: 0, kind: input, shape index: {}, may-alias: {0,1}]   ;;  %s39_s1 = inlined_call_operand.vmem [shape: f32[8,256], index: 1, kind: output, shape index: {}, may-alias: {0,1}]  }
   0x1   :  { %v8_v0 = vld [vmem:[%s38_s0] sm:$0xff]  ;;  %v9_v1 = vld [vmem:[%s38_s0 + $0x8] sm:$0xff] }
   0x2   :  { %10 = vst [vmem:[%s39_s1] sm:$0xff] %v8_v0  ;;  %11 = vst [vmem:[%s39_s1 + $0x8] sm:$0xff] %v9_v1 }

</bundles_post_ra>
